<compile_context>
chip_gen: v5e
topology: v5e:2x2
jax: 0.10.0
libtpu: 0.0.40
codegen_flags: <defaults>
</compile_context>

<pallas_src>
import jax
import jax.numpy as jnp
from jax.experimental import pallas as pl
from jax.experimental.pallas import tpu as pltpu


def awe_kernel(emb_ref, len_ref, out_ref):
    # emb_ref: (TB, TL, TD) streaming input tile (native dtype)
    # len_ref: (TB, 1) int32 sentence lengths (same block across d/l steps)
    # out_ref: (TB, TD) f32 output tile; block index constant across the L axis,
    #          so it is VMEM-resident and doubles as the accumulator.
    l = pl.program_id(2)

    @pl.when(l == 0)
    def _init():
        out_ref[...] = jnp.zeros_like(out_ref)

    # Fused f32-accumulating reduction over the sequence tile (no f32 temp of
    # the full streaming tile).
    out_ref[...] += jnp.sum(emb_ref[...], axis=1, dtype=jnp.float32)

    @pl.when(l == pl.num_programs(2) - 1)
    def _finalize():
        # Exact division for parity with torch's float division.
        out_ref[...] = out_ref[...] / len_ref[...].astype(jnp.float32)


def _largest_aligned_divisor(dim: int, cap: int, align: int):
    """Largest t <= cap with t % align == 0 and dim % t == 0, or None."""
    cap = min(cap, dim)
    t = (cap // align) * align
    while t >= align:
        if dim % t == 0:
            return t
        t -= align
    return None


def _select_tiles(B: int, L: int, D: int, itemsize: int):
    """Bytes-aware tile selection. Targets ~8 MiB per streaming emb buffer."""
    budget = 8 * 1024 * 1024  # per emb buffer; Pallas double-buffers it
    # Dtype-aware sublane alignment for the second-to-last dim of the emb block.
    sub = {1: 32, 2: 16, 4: 8}.get(itemsize, 8)

    # TD: prefer full D so every (TL, D) slab DMAs contiguously per batch row.
    if D * sub * itemsize <= budget:
        TD = D
    else:
        TD = _largest_aligned_divisor(D, budget // (sub * itemsize), 128) or D
    row_bytes = TD * itemsize

    # TB: small batch tile; must be a multiple of 8 or the full batch (output
    # block second-to-last-dim constraint). Keep >=2 batch blocks for v7x's
    # two TensorCores when the batch is large enough.
    tb_cap = 32
    if B >= 16:
        tb_cap = min(tb_cap, B // 2)
    TB = _largest_aligned_divisor(B, tb_cap, 8) or B

    # TL: sequence (reduction) tile from the remaining per-step budget.
    max_tl = max(budget // (TB * row_bytes), 1)
    if L <= max_tl:
        TL = L  # whole sequence per step (full dim is always legal)
    else:
        TL = (_largest_aligned_divisor(L, max_tl, sub)      # native-tile aligned
              or _largest_aligned_divisor(L, max_tl, 8)     # minimally aligned
              or L)  # awkward L (no aligned divisor): full dim; vmem limit has headroom
    return TB, TL, TD


def awe_encoder(embeddings: jax.Array, sentence_length: jax.Array) -> jax.Array:
    """embeddings: (B, L, D); sentence_length: (B,) -> (B, D) float32."""
    B, L, D = embeddings.shape
    lens_2d = sentence_length.reshape(B, 1).astype(jnp.int32)

    TB, TL, TD = _select_tiles(B, L, D, jnp.dtype(embeddings.dtype).itemsize)
    grid = (B // TB, D // TD, L // TL)  # reduction axis (L) last

    return pl.pallas_call(
        awe_kernel,
        out_shape=jax.ShapeDtypeStruct((B, D), jnp.float32),
        grid_spec=pltpu.PrefetchScalarGridSpec(
            num_scalar_prefetch=0,
            grid=grid,
            in_specs=[
                # Streamed embedding tiles; contiguous (TL, D) slabs when TD == D.
                pl.BlockSpec((TB, TL, TD), lambda b, d, l: (b, l, d)),
                # Tiny per-batch lengths; same block across d/l -> no re-DMA.
                pl.BlockSpec((TB, 1), lambda b, d, l: (b, 0)),
            ],
            # Same block across the L axis => the f32 output stays VMEM-resident
            # and is used directly as the accumulator; written back once per
            # (b, d) tile.
            out_specs=pl.BlockSpec((TB, TD), lambda b, d, l: (b, d)),
        ),
        compiler_params=pltpu.CompilerParams(
            dimension_semantics=("parallel", "parallel", "arbitrary"),
            vmem_limit_bytes=48 * 1024 * 1024,
        ),
    )(embeddings, lens_2d)


def awe_encoder_ref(embeddings, sentence_length):
    return (jnp.sum(embeddings.astype(jnp.float32), axis=1)
            / sentence_length[:, None].astype(jnp.float32))


if __name__ == "__main__":
    key = jax.random.PRNGKey(0)
    k_emb, k_len = jax.random.split(key)

    B, L, D = 2, 8, 32
    embeddings = jax.random.normal(k_emb, (B, L, D), dtype=jnp.float32)
    sentence_length = jax.random.randint(k_len, (B,), minval=1, maxval=L + 1,
                                         dtype=jnp.int32)

    out = awe_encoder(embeddings, sentence_length)
    out = jax.block_until_ready(out)

    ref = awe_encoder_ref(embeddings, sentence_length)
    assert out.shape == (B, D)
    assert jnp.allclose(out, ref, atol=1e-5, rtol=1e-5), "mismatch vs reference"

    print("KERNEL_OK")
</pallas_src>

<mosaic_0001>
module attributes {stable_mosaic.version = 11 : i64} {
  func.func @awe_kernel(%arg0: i32, %arg1: i32, %arg2: i32, %arg3: memref<2x8x32xf32, #tpu.memory_space<vmem>>, %arg4: memref<2x1xi32, #tpu.memory_space<vmem>>, %arg5: memref<2x32xf32, #tpu.memory_space<vmem>>) attributes {dimension_semantics = [#tpu.dimension_semantics<parallel>, #tpu.dimension_semantics<parallel>, #tpu.dimension_semantics<arbitrary>], iteration_bounds = array<i64: 1, 1, 1>, scalar_prefetch = 0 : i64, scratch_operands = 0 : i64, tpu.core_type = #tpu.core_type<tc>, window_params = [{transform_indices = @transform_0, window_bounds = array<i64: 2, 8, 32>}, {transform_indices = @transform_1, window_bounds = array<i64: 2, 1>}, {transform_indices = @transform_2, window_bounds = array<i64: 2, 32>}]} {
    %c0_i32 = arith.constant 0 : i32
    %0 = arith.cmpi eq, %arg2, %c0_i32 : i32
    %1 = arith.extui %0 : i1 to i32
    %c0_i32_0 = arith.constant 0 : i32
    %2 = arith.cmpi ne, %1, %c0_i32_0 : i32
    scf.if %2 {
      %cst_9 = arith.constant 0.000000e+00 : f32
      %11 = vector.broadcast %cst_9 : f32 to vector<2x32xf32>
      %c0_10 = arith.constant 0 : index
      %c0_11 = arith.constant 0 : index
      %12 = vector.load %arg5[%c0_10, %c0_11] : memref<2x32xf32, #tpu.memory_space<vmem>>, vector<2x32xf32>
      tpu.vector_store %arg5[%c0_10, %c0_11], %11 {strides = array<i32>} : memref<2x32xf32, #tpu.memory_space<vmem>>, vector<2x32xf32>,
    } else {
    }
    %c0 = arith.constant 0 : index
    %c0_1 = arith.constant 0 : index
    %3 = vector.load %arg5[%c0, %c0_1] : memref<2x32xf32, #tpu.memory_space<vmem>>, vector<2x32xf32>
    %c0_2 = arith.constant 0 : index
    %c0_3 = arith.constant 0 : index
    %c0_4 = arith.constant 0 : index
    %4 = vector.load %arg3[%c0_2, %c0_3, %c0_4] : memref<2x8x32xf32, #tpu.memory_space<vmem>>, vector<2x8x32xf32>
    %cst = arith.constant dense<0.000000e+00> : vector<2x32xf32>
    %5 = vector.multi_reduction <add>, %4, %cst [1] : vector<2x8x32xf32> to vector<2x32xf32>
    %6 = arith.addf %3, %5 : vector<2x32xf32>
    %c0_5 = arith.constant 0 : index
    %c0_6 = arith.constant 0 : index
    %7 = vector.load %arg5[%c0_5, %c0_6] : memref<2x32xf32, #tpu.memory_space<vmem>>, vector<2x32xf32>
    tpu.vector_store %arg5[%c0_5, %c0_6], %6 {strides = array<i32>} : memref<2x32xf32, #tpu.memory_space<vmem>>, vector<2x32xf32>,
    %c0_i32_7 = arith.constant 0 : i32
    %8 = arith.cmpi eq, %arg2, %c0_i32_7 : i32
    %9 = arith.extui %8 : i1 to i32
    %c0_i32_8 = arith.constant 0 : i32
    %10 = arith.cmpi ne, %9, %c0_i32_8 : i32
    scf.if %10 {
      %c0_9 = arith.constant 0 : index
      %c0_10 = arith.constant 0 : index
      %11 = vector.load %arg5[%c0_9, %c0_10] : memref<2x32xf32, #tpu.memory_space<vmem>>, vector<2x32xf32>
      %c0_11 = arith.constant 0 : index
      %c0_12 = arith.constant 0 : index
      %12 = vector.load %arg4[%c0_11, %c0_12] : memref<2x1xi32, #tpu.memory_space<vmem>>, vector<2x1xi32>
      %13 = arith.sitofp %12 : vector<2x1xi32> to vector<2x1xf32>
      %14 = vector.broadcast %13 : vector<2x1xf32> to vector<2x32xf32>
      %15 = arith.divf %11, %14 : vector<2x32xf32>
      %c0_13 = arith.constant 0 : index
      %c0_14 = arith.constant 0 : index
      %16 = vector.load %arg5[%c0_13, %c0_14] : memref<2x32xf32, #tpu.memory_space<vmem>>, vector<2x32xf32>
      tpu.vector_store %arg5[%c0_13, %c0_14], %15 {strides = array<i32>} : memref<2x32xf32, #tpu.memory_space<vmem>>, vector<2x32xf32>,
    } else {
    }
    return
  }
  func.func @transform_0(%arg0: i32, %arg1: i32, %arg2: i32) -> (i32, i32, i32) {
    %c0_i32 = arith.constant 0 : i32
    return %arg0, %arg2, %arg1 : i32, i32, i32
  }
  func.func @transform_1(%arg0: i32, %arg1: i32, %arg2: i32) -> (i32, i32) {
    %c0_i32 = arith.constant 0 : i32
    %c0_i32_0 = arith.constant 0 : i32
    return %arg0, %c0_i32 : i32, i32
  }
  func.func @transform_2(%arg0: i32, %arg1: i32, %arg2: i32) -> (i32, i32) {
    %c0_i32 = arith.constant 0 : i32
    return %arg0, %arg1 : i32, i32
  }
}

</mosaic_0001>

<bundles_post_ra>
// kernel: tpu_custom_call.1
= control target key start
LH: loop header
LB: loop body
LE: loop exit
PB: predicated region body
PF: predicated region fallthrough
CT: control target
= control target key end

     0   :  { %7 = vsyncpa [#allocation3], 0  ;;  %s198_s0 = inlined_call_operand.hbm [shape: f32[2,8,32], index: 0, kind: input, shape index: {}]   ;;  %s199_s1 = inlined_call_operand.vmem [shape: s32[2,1], index: 1, kind: input, shape index: {}]   ;;  %s200_s2 = inlined_call_operand.hbm [shape: f32[2,32], index: 2, kind: output, shape index: {}]  }
   0x1   :  { %8 = vsyncpa [#allocation4], 0  ;;  %s13_s11 = sshll.u32 %s198_s0, 4  ;;  %s165_s12 = smov [#allocation2]   ;;  %s14_s11 = int_to_ptr.hbm [resolvable:$true] %s13_s11 }
   0x2   :  { %s15_s13 = sshll.u32 %s165_s12, 4  ;;  %s166_s14 = smov 128   ;;  %s16_s13 = int_to_ptr.vmem [resolvable:$true] %s15_s13 }
   0x3   :  { %s167_s15 = smov 8  }
   0x4   :  { %21 = dma.hbm_to_vmem [thread:$0]  %s14_s11, 256, %s16_s13, [#allocation3], %s166_s14, %s166_s14, %s167_s15  }
   0x5   :  { %161 = dma.done.wait [#allocation3], 256  }
   0x6   :  { %162 = vsyncadd [#allocation3], 4294967040  ;;  %vm32_vm0 = vcmask 254976   ;;  %v168_v0 = vmov 0.0   ;;  %v169_v1 = vmov 0   ;;  %vm37_vm1 = vcmask 261120  }
   0x7   :  { %33 = vst.msk [vmem:[#allocation5] sm:$0x3] %vm32_vm0, %v168_v0  ;;  %110 = vset.pattern.permute.xlu0 %v169_v1  ;;  %v35_v2 = vld [vmem:[#allocation2] sm:$0xff]  ;;  %v36_v3 = vld [vmem:[#allocation2 + $0x8] sm:$0xff]  ;;  %vm54_vm2 = vcmask 1041409   ;;  %s94_s20 = sshll.u32 %s200_s2, 4  ;;  %s95_s20 = int_to_ptr.hbm [resolvable:$true] %s94_s20 }
   0x8   :  { %v64_v4 = vld [vmem:[%s199_s1] sm:$0x3]  ;;  %v38_v5 = vsel %vm37_vm1, %v35_v2, 0.0  ;;  %v45_v6 = vsel %vm37_vm1, %v36_v3, 0.0  ;;  %s170_s1 = smov [#allocation5]  }
   0x9   :  { %v65_v7 = vcvt.s32.f32 %v64_v4  ;;  %v39_v8 = vrot.slane %v38_v5, 4  ;;  %v46_v9 = vrot.slane %v45_v6, 4  ;;  %s92_s17 = sshll.u32 %s170_s1, 4  ;;  %s93_s17 = int_to_ptr.vmem [resolvable:$true] %s92_s17 }
   0xb   :  { %68 = vperm.xlu0 %110, %v65_v7   ;;  %v40_v10 = vadd.f32 %v39_v8, %v38_v5  ;;  %v47_v11 = vadd.f32 %v46_v9, %v45_v6 }
   0xd   :  { %v41_v12 = vrot.slane %v40_v10, 2  ;;  %v48_v13 = vrot.slane %v47_v11, 2 }
   0xe   :  { %v34_v18 = vld [vmem:[#allocation5] sm:$0x3] }
   0xf   :  { %v42_v14 = vadd.f32 %v41_v12, %v40_v10  ;;  %v49_v15 = vadd.f32 %v48_v13, %v47_v11 }
  0x11   :  { %v43_v16 = vrot.slane %v42_v14, 1  ;;  %v50_v17 = vrot.slane %v49_v15, 1 }
  0x13   :  { %v44_v19 = vadd.f32 %v43_v16, %v42_v14  ;;  %v51_v20 = vadd.f32 %v50_v17, %v49_v15 }
  0x15   :  { %v55_v21 = vsel %vm54_vm2, %v51_v20, %v44_v19 }
  0x16   :  { %v57_v22 = vadd.f32 %v55_v21, %v34_v18 }
  0x18   :  { %59 = vst.msk [vmem:[#allocation5] sm:$0x3] %vm32_vm0, %v57_v22 }
  0x1f   :  { %v63_v31 = vld [vmem:[#allocation5] sm:$0x3] }
  0x7d   :  { %v69_v23 = vpop.permute.xlu0 %68 }
  0x7e   :  { %111 = vrcp.f32 %v69_v23  ;;  %v82_v27 = vand.u32 2147483648, %v69_v23  ;;  %v80_v29 = vand.u32 2147483647, %v69_v23  ;;  %vm76_vm4 = vweird.f32 %v69_v23 }
  0x80   :  { %v83_v32 = vor.u32 1.1754944e-38, %v82_v27  ;;  %vm81_vm6 = vcmp.eq.f32.partialorder %v80_v29, 8.507059e+37 }
  0x84   :  { %v112_v24 = vpop.eup %111 }
  0x85   :  { %v72_v25 = vmul.f32 %v112_v24, %v69_v23  ;;  %vm77_vm3 = vweird.f32 %v112_v24 }
  0x86   :  { %vm78_vm5 = vmor %vm76_vm4, %vm77_vm3 }
  0x87   :  { %v73_v26 = vsub.f32 1.0, %v72_v25 }
  0x89   :  { %v74_v28 = vmul.f32 %v112_v24, %v73_v26 }
  0x8b   :  { %v75_v30 = vadd.f32 %v112_v24, %v74_v28 }
  0x8d   :  { %v79_v33 = vsel %vm78_vm5, %v112_v24, %v75_v30 }
  0x8e   :  { %v84_v34 = vsel %vm81_vm6, %v83_v32, %v79_v33 }
  0x8f   :  { %v85_v35 = vmul.f32 %v84_v34, %v63_v31 }
  0x91   :  { %86 = vst.msk [vmem:[#allocation5] sm:$0x3] %vm32_vm0, %v85_v35 }
  0x92   :  { %97 = dma.vmem_to_hbm [thread:$0]  %s93_s17, 32, %s95_s20, [#allocation4]  }
  0x93   :  { %163 = dma.done.wait [#allocation4], 32  }
  0x94   :  { %164 = vsyncadd [#allocation4], 4294967264 }
  0x95   :  { %102 = vsyncpa [#allocation3], 1 }
  0x96   :  { %103 = vsyncpa [#allocation4], 1 }

</bundles_post_ra>
